<compile_context>
chip_gen: v7x
topology: tpu7x:2x2x1
jax: 0.10.0
libtpu: 0.0.40
codegen_flags: <defaults>
</compile_context>

<pallas_src>
import jax
import jax.numpy as jnp
from jax.experimental import pallas as pl
from jax.experimental.pallas import tpu as pltpu

BN_EPS = 1e-5


def _ru(n, m):
    return ((n + m - 1) // m) * m


def _make_kernel(num_layers, hidden, channels, conv_offs, lstm_offs):
    """Kernel body for static (num_layers, hidden, channels) and slab offsets."""
    C, H, L = channels, hidden, num_layers

    def kernel(x_ref, h_prev_ref, c_prev_ref, wconv_ref, wlstm_ref, b_ref,
               out_ref, h_out_ref, c_out_ref):

        def mm(a, w_ref, row_off, rows, cols):
            # static, sublane-aligned slice of the bf16 weight slab
            w = w_ref[row_off:row_off + rows, 0:cols]
            return jnp.dot(a.astype(jnp.bfloat16), w,
                           preferred_element_type=jnp.float32)

        # ---- conv_block_1: 1x1 conv (BN folded) + ReLU -----------------------
        x = x_ref[...]                                          # (1, C) f32
        h = jnp.maximum(mm(x, wconv_ref, conv_offs[0], C, C)
                        + b_ref[0:1, 0:C], 0.0)

        # ---- stacked LSTM cells (single time step, fused gate matmul) --------
        # TODO(synk): DecomposedLSTM source not provided; implemented as the
        # standard single-step LSTM cell (reference gate order i,f,g,o,
        # reordered to i,f,o,g on the host) with input/hidden weights fused.
        for layer in range(L):
            in_dim = C if layer == 0 else H
            h_p = h_prev_ref[layer:layer + 1, :]                # (1, H)
            c_p = c_prev_ref[layer:layer + 1, :]                # (1, H)
            xi = jnp.concatenate([h, h_p], axis=1)              # (1, in_dim+H)
            gates = (mm(xi, wlstm_ref, lstm_offs[layer], in_dim + H, 4 * H)
                     + b_ref[1 + layer:2 + layer, 0:4 * H])
            # gate layout (host-reordered): [i | f | o | g]
            ifo = jax.nn.sigmoid(gates[:, 0:3 * H])             # one EUP pass
            g_g = jnp.tanh(gates[:, 3 * H:4 * H])
            i_g = ifo[:, 0:H]
            f_g = ifo[:, H:2 * H]
            o_g = ifo[:, 2 * H:3 * H]
            c_new = f_g * c_p + i_g * g_g
            h_new = o_g * jnp.tanh(c_new)
            h_out_ref[layer:layer + 1, :] = h_new
            c_out_ref[layer:layer + 1, :] = c_new
            h = h_new

        # ---- conv_block_2: 1x1 conv (BN folded) + ReLU -----------------------
        y2 = jnp.maximum(mm(h, wconv_ref, conv_offs[1], H, C)
                         + b_ref[1 + L:2 + L, 0:C], 0.0)

        # ---- conv_3 + sigmoid -------------------------------------------------
        y3 = mm(y2, wconv_ref, conv_offs[2], C, C) + b_ref[2 + L:3 + L, 0:C]
        out_ref[...] = jax.nn.sigmoid(y3)

    return kernel


def _reorder_gates(w_or_b):
    """Reorder last dim gate blocks from (i,f,g,o) to (i,f,o,g)."""
    H4 = w_or_b.shape[-1]
    H = H4 // 4
    i = w_or_b[..., 0:H]
    f = w_or_b[..., H:2 * H]
    g = w_or_b[..., 2 * H:3 * H]
    o = w_or_b[..., 3 * H:4 * H]
    return jnp.concatenate([i, f, o, g], axis=-1)


def pack_params(params, *, channels, hidden, num_layers):
    """Fold BN, fuse LSTM gate weights, pack everything into 3 slabs (host)."""
    C, H, L = channels, hidden, num_layers
    w1, b1, g1, be1, m1, v1 = params[0:6]
    lstm = params[6:6 + 4 * L]
    w2, b2, g2, be2, m2, v2 = params[6 + 4 * L:12 + 4 * L]
    w3, b3 = params[12 + 4 * L:14 + 4 * L]

    # fold inference-mode BatchNorm into the preceding 1x1 convs
    s1 = g1 * jax.lax.rsqrt(v1 + BN_EPS)
    w1f, b1f = w1 * s1, (b1 - m1) * s1 + be1
    s2 = g2 * jax.lax.rsqrt(v2 + BN_EPS)
    w2f, b2f = w2 * s2, (b2 - m2) * s2 + be2

    # fuse each layer's (W_ih, W_hh) into one matrix, pre-add the biases,
    # and reorder gate columns (i,f,g,o) -> (i,f,o,g) so sigmoid gates are
    # contiguous in the kernel.
    wcats, bcats = [], []
    for layer in range(L):
        wih, whh, bih, bhh = lstm[4 * layer:4 * layer + 4]
        wcats.append(_reorder_gates(jnp.concatenate([wih, whh], axis=0)))
        bcats.append(_reorder_gates(bih + bhh))

    # conv weight slab (bf16): [w1f; w2f; w3], block starts sublane(8)-aligned
    conv_blocks = [w1f, w2f, w3]
    conv_cols = _ru(C, 128)
    conv_offs, off = [], 0
    for wb in conv_blocks:
        conv_offs.append(off)
        off += _ru(wb.shape[0], 8)
    wconv = jnp.zeros((max(off, 8), conv_cols), jnp.bfloat16)
    for o, wb in zip(conv_offs, conv_blocks):
        wconv = wconv.at[o:o + wb.shape[0], 0:wb.shape[1]].set(
            wb.astype(jnp.bfloat16))

    # LSTM weight slab (bf16)
    lstm_cols = _ru(4 * H, 128)
    lstm_offs, off = [], 0
    for wb in wcats:
        lstm_offs.append(off)
        off += _ru(wb.shape[0], 8)
    wlstm = jnp.zeros((max(off, 8), lstm_cols), jnp.bfloat16)
    for o, wb in zip(lstm_offs, wcats):
        wlstm = wlstm.at[o:o + wb.shape[0], 0:wb.shape[1]].set(
            wb.astype(jnp.bfloat16))

    # bias slab (f32): row 0 conv1, rows 1..L lstm, row L+1 conv2, row L+2 conv3
    bias_rows = [b1f] + bcats + [b2f, b3]
    bcols = max(conv_cols, lstm_cols)
    bslab = jnp.zeros((len(bias_rows), bcols), jnp.float32)
    for i, bb in enumerate(bias_rows):
        bslab = bslab.at[i:i + 1, 0:bb.shape[1]].set(bb.astype(jnp.float32))

    return wconv, wlstm, bslab, tuple(conv_offs), tuple(lstm_offs)


def convlstm_denoiser_forward(x, h_prev, c_prev, packed, *, hidden, num_layers):
    """x: (1, C, 1) NCW; h_prev, c_prev: (num_layers, hidden).

    Returns (output (1, C, 1), h_out (num_layers, hidden),
             c_out (num_layers, hidden)) — matching the torch module.
    """
    wconv, wlstm, bslab, conv_offs, lstm_offs = packed
    c_in = x.shape[1]
    # NOTE: the reference module only works when in_channels == out_channels
    # (LSTM layer 0 is declared with input_size=in_channels but consumes the
    # conv_block_1 output of width out_channels).
    x2d = x.reshape(1, c_in).astype(jnp.float32)

    out2d, h_out, c_out_state = pl.pallas_call(
        _make_kernel(num_layers, hidden, c_in, conv_offs, lstm_offs),
        out_shape=(
            jax.ShapeDtypeStruct((1, c_in), jnp.float32),
            jax.ShapeDtypeStruct((num_layers, hidden), jnp.float32),
            jax.ShapeDtypeStruct((num_layers, hidden), jnp.float32),
        ),
        in_specs=[pl.BlockSpec(memory_space=pltpu.MemorySpace.VMEM)] * 6,
        out_specs=(
            pl.BlockSpec(memory_space=pltpu.MemorySpace.VMEM),
            pl.BlockSpec(memory_space=pltpu.MemorySpace.VMEM),
            pl.BlockSpec(memory_space=pltpu.MemorySpace.VMEM),
        ),
    )(x2d, h_prev.astype(jnp.float32), c_prev.astype(jnp.float32),
      wconv, wlstm, bslab)

    return out2d.reshape(1, c_in, 1), h_out, c_out_state


def init_params(key, c_in, c_out, hidden, num_layers):
    """Deterministic synthetic parameters in the torch module's layout."""
    keys = list(jax.random.split(key, 64))
    it = iter(keys)

    def nrm(shape, scale=0.1):
        return scale * jax.random.normal(next(it), shape, dtype=jnp.float32)

    params = []
    # conv_block_1: Conv1d(c_in -> c_out, k=1) weight^T/bias, BatchNorm1d(c_out)
    params += [nrm((c_in, c_out)), nrm((1, c_out))]
    params += [1.0 + nrm((1, c_out), 0.05), nrm((1, c_out), 0.05),
               nrm((1, c_out), 0.05), 1.0 + jnp.abs(nrm((1, c_out), 0.05))]
    # LSTM layers (standard cell, gate order i,f,g,o), weights stored transposed
    for layer in range(num_layers):
        in_dim = c_in if layer == 0 else hidden
        params += [nrm((in_dim, 4 * hidden)),    # W_ih^T
                   nrm((hidden, 4 * hidden)),    # W_hh^T
                   nrm((1, 4 * hidden)),         # b_ih
                   nrm((1, 4 * hidden))]         # b_hh
    # conv_block_2: Conv1d(hidden -> c_out, k=1), BatchNorm1d(c_out)
    params += [nrm((hidden, c_out)), nrm((1, c_out))]
    params += [1.0 + nrm((1, c_out), 0.05), nrm((1, c_out), 0.05),
               nrm((1, c_out), 0.05), 1.0 + jnp.abs(nrm((1, c_out), 0.05))]
    # conv_3: Conv1d(c_out -> c_out, k=1)
    params += [nrm((c_out, c_out)), nrm((1, c_out))]
    return params


if __name__ == "__main__":
    # Lane-aligned small shapes (module defaults are 257 channels / 256 hidden).
    C_IN = C_OUT = 128
    HIDDEN = 128
    NUM_LAYERS = 2

    key = jax.random.PRNGKey(0)
    kx, kh, kc, kp = jax.random.split(key, 4)

    x = jax.random.normal(kx, (1, C_IN, 1), dtype=jnp.float32)     # NCW, L=1
    h_prev = 0.1 * jax.random.normal(kh, (NUM_LAYERS, HIDDEN), dtype=jnp.float32)
    c_prev = 0.1 * jax.random.normal(kc, (NUM_LAYERS, HIDDEN), dtype=jnp.float32)

    raw_params = init_params(kp, C_IN, C_OUT, HIDDEN, NUM_LAYERS)
    packed = pack_params(raw_params, channels=C_IN, hidden=HIDDEN,
                         num_layers=NUM_LAYERS)

    output, h_out, c_out = convlstm_denoiser_forward(
        x, h_prev, c_prev, packed, hidden=HIDDEN, num_layers=NUM_LAYERS)
    jax.block_until_ready((output, h_out, c_out))

    assert output.shape == (1, C_OUT, 1)
    assert h_out.shape == (NUM_LAYERS, HIDDEN)
    assert c_out.shape == (NUM_LAYERS, HIDDEN)
    assert bool(jnp.all(jnp.isfinite(output)))
    assert bool(jnp.all((output >= 0.0) & (output <= 1.0)))
    assert bool(jnp.all(jnp.isfinite(h_out))) and bool(jnp.all(jnp.isfinite(c_out)))
    print("KERNEL_OK")
</pallas_src>

<mosaic_0001>
module attributes {stable_mosaic.version = 11 : i64} {
  func.func @kernel(%arg0: memref<1x128xf32, #tpu.memory_space<vmem>>, %arg1: memref<2x128xf32, #tpu.memory_space<vmem>>, %arg2: memref<2x128xf32, #tpu.memory_space<vmem>>, %arg3: memref<384x128xbf16, #tpu.memory_space<vmem>>, %arg4: memref<512x512xbf16, #tpu.memory_space<vmem>>, %arg5: memref<5x512xf32, #tpu.memory_space<vmem>>, %arg6: memref<1x128xf32, #tpu.memory_space<vmem>>, %arg7: memref<2x128xf32, #tpu.memory_space<vmem>>, %arg8: memref<2x128xf32, #tpu.memory_space<vmem>>) attributes {dimension_semantics = [], scalar_prefetch = 0 : i64, scratch_operands = 0 : i64, tpu.core_type = #tpu.core_type<tc>} {
    %c0 = arith.constant 0 : index
    %c0_0 = arith.constant 0 : index
    %0 = vector.load %arg0[%c0, %c0_0] : memref<1x128xf32, #tpu.memory_space<vmem>>, vector<1x128xf32>
    %c0_1 = arith.constant 0 : index
    %c0_2 = arith.constant 0 : index
    %1 = vector.load %arg3[%c0_1, %c0_2] : memref<384x128xbf16, #tpu.memory_space<vmem>>, vector<128x128xbf16>
    %2 = arith.truncf %0 : vector<1x128xf32> to vector<1x128xbf16>
    %cst = arith.constant dense<0.000000e+00> : vector<1x128xf32>
    %3 = tpu.matmul %2, %1, %cst {dimension_numbers = #tpu.dot_dimension_numbers<[1], [0], [0], [1], [0, 0, 1, 1], [], []>} : vector<1x128xbf16>, vector<128x128xbf16>, vector<1x128xf32> -> vector<1x128xf32>
    %c0_3 = arith.constant 0 : index
    %c0_4 = arith.constant 0 : index
    %4 = vector.load %arg5[%c0_3, %c0_4] : memref<5x512xf32, #tpu.memory_space<vmem>>, vector<1x128xf32>
    %5 = arith.addf %3, %4 : vector<1x128xf32>
    %cst_5 = arith.constant 0.000000e+00 : f32
    %6 = vector.broadcast %cst_5 : f32 to vector<1x128xf32>
    %7 = arith.maximumf %5, %6 : vector<1x128xf32>
    %c0_6 = arith.constant 0 : index
    %c0_7 = arith.constant 0 : index
    %8 = vector.load %arg1[%c0_6, %c0_7] : memref<2x128xf32, #tpu.memory_space<vmem>>, vector<1x128xf32>
    %c0_8 = arith.constant 0 : index
    %c0_9 = arith.constant 0 : index
    %9 = vector.load %arg2[%c0_8, %c0_9] : memref<2x128xf32, #tpu.memory_space<vmem>>, vector<1x128xf32>
    %10 = tpu.concatenate %7, %8 in 1 : vector<1x128xf32>, vector<1x128xf32> -> vector<1x256xf32>
    %c0_10 = arith.constant 0 : index
    %c0_11 = arith.constant 0 : index
    %11 = vector.load %arg4[%c0_10, %c0_11] : memref<512x512xbf16, #tpu.memory_space<vmem>>, vector<256x512xbf16>
    %12 = arith.truncf %10 : vector<1x256xf32> to vector<1x256xbf16>
    %cst_12 = arith.constant dense<0.000000e+00> : vector<1x512xf32>
    %13 = tpu.matmul %12, %11, %cst_12 {dimension_numbers = #tpu.dot_dimension_numbers<[1], [0], [0], [1], [0, 0, 1, 1], [], []>} : vector<1x256xbf16>, vector<256x512xbf16>, vector<1x512xf32> -> vector<1x512xf32>
    %c1 = arith.constant 1 : index
    %c0_13 = arith.constant 0 : index
    %14 = vector.load %arg5[%c1, %c0_13] : memref<5x512xf32, #tpu.memory_space<vmem>>, vector<1x512xf32>
    %15 = arith.addf %13, %14 : vector<1x512xf32>
    %16 = vector.extract_strided_slice %15 {offsets = [0, 0], sizes = [1, 384], strides = [1, 1]} : vector<1x512xf32> to vector<1x384xf32>
    %17 = arith.negf %16 : vector<1x384xf32>
    %18 = math.exp %17 : vector<1x384xf32>
    %cst_14 = arith.constant 1.000000e+00 : f32
    %19 = vector.broadcast %cst_14 : f32 to vector<1x384xf32>
    %20 = arith.addf %19, %18 : vector<1x384xf32>
    %21 = arith.divf %19, %20 : vector<1x384xf32>
    %22 = vector.extract_strided_slice %15 {offsets = [0, 384], sizes = [1, 128], strides = [1, 1]} : vector<1x512xf32> to vector<1x128xf32>
    %23 = math.tanh %22 : vector<1x128xf32>
    %24 = vector.extract_strided_slice %21 {offsets = [0, 0], sizes = [1, 128], strides = [1, 1]} : vector<1x384xf32> to vector<1x128xf32>
    %25 = vector.extract_strided_slice %21 {offsets = [0, 128], sizes = [1, 128], strides = [1, 1]} : vector<1x384xf32> to vector<1x128xf32>
    %26 = vector.extract_strided_slice %21 {offsets = [0, 256], sizes = [1, 128], strides = [1, 1]} : vector<1x384xf32> to vector<1x128xf32>
    %27 = arith.mulf %25, %9 : vector<1x128xf32>
    %28 = arith.mulf %24, %23 : vector<1x128xf32>
    %29 = arith.addf %27, %28 : vector<1x128xf32>
    %30 = math.tanh %29 : vector<1x128xf32>
    %31 = arith.mulf %26, %30 : vector<1x128xf32>
    %c0_15 = arith.constant 0 : index
    %c0_16 = arith.constant 0 : index
    %32 = vector.load %arg7[%c0_15, %c0_16] : memref<2x128xf32, #tpu.memory_space<vmem>>, vector<1x128xf32>
    tpu.vector_store %arg7[%c0_15, %c0_16], %31 {strides = array<i32>} : memref<2x128xf32, #tpu.memory_space<vmem>>, vector<1x128xf32>,
    %c0_17 = arith.constant 0 : index
    %c0_18 = arith.constant 0 : index
    %33 = vector.load %arg8[%c0_17, %c0_18] : memref<2x128xf32, #tpu.memory_space<vmem>>, vector<1x128xf32>
    tpu.vector_store %arg8[%c0_17, %c0_18], %29 {strides = array<i32>} : memref<2x128xf32, #tpu.memory_space<vmem>>, vector<1x128xf32>,
    %c1_19 = arith.constant 1 : index
    %c0_20 = arith.constant 0 : index
    %34 = vector.load %arg1[%c1_19, %c0_20] : memref<2x128xf32, #tpu.memory_space<vmem>>, vector<1x128xf32>
    %c1_21 = arith.constant 1 : index
    %c0_22 = arith.constant 0 : index
    %35 = vector.load %arg2[%c1_21, %c0_22] : memref<2x128xf32, #tpu.memory_space<vmem>>, vector<1x128xf32>
    %36 = tpu.concatenate %31, %34 in 1 : vector<1x128xf32>, vector<1x128xf32> -> vector<1x256xf32>
    %c256 = arith.constant 256 : index
    %c0_23 = arith.constant 0 : index
    %37 = vector.load %arg4[%c256, %c0_23] : memref<512x512xbf16, #tpu.memory_space<vmem>>, vector<256x512xbf16>
    %38 = arith.truncf %36 : vector<1x256xf32> to vector<1x256xbf16>
    %cst_24 = arith.constant dense<0.000000e+00> : vector<1x512xf32>
    %39 = tpu.matmul %38, %37, %cst_24 {dimension_numbers = #tpu.dot_dimension_numbers<[1], [0], [0], [1], [0, 0, 1, 1], [], []>} : vector<1x256xbf16>, vector<256x512xbf16>, vector<1x512xf32> -> vector<1x512xf32>
    %c2 = arith.constant 2 : index
    %c0_25 = arith.constant 0 : index
    %40 = vector.load %arg5[%c2, %c0_25] : memref<5x512xf32, #tpu.memory_space<vmem>>, vector<1x512xf32>
    %41 = arith.addf %39, %40 : vector<1x512xf32>
    %42 = vector.extract_strided_slice %41 {offsets = [0, 0], sizes = [1, 384], strides = [1, 1]} : vector<1x512xf32> to vector<1x384xf32>
    %43 = arith.negf %42 : vector<1x384xf32>
    %44 = math.exp %43 : vector<1x384xf32>
    %cst_26 = arith.constant 1.000000e+00 : f32
    %45 = vector.broadcast %cst_26 : f32 to vector<1x384xf32>
    %46 = arith.addf %45, %44 : vector<1x384xf32>
    %47 = arith.divf %45, %46 : vector<1x384xf32>
    %48 = vector.extract_strided_slice %41 {offsets = [0, 384], sizes = [1, 128], strides = [1, 1]} : vector<1x512xf32> to vector<1x128xf32>
    %49 = math.tanh %48 : vector<1x128xf32>
    %50 = vector.extract_strided_slice %47 {offsets = [0, 0], sizes = [1, 128], strides = [1, 1]} : vector<1x384xf32> to vector<1x128xf32>
    %51 = vector.extract_strided_slice %47 {offsets = [0, 128], sizes = [1, 128], strides = [1, 1]} : vector<1x384xf32> to vector<1x128xf32>
    %52 = vector.extract_strided_slice %47 {offsets = [0, 256], sizes = [1, 128], strides = [1, 1]} : vector<1x384xf32> to vector<1x128xf32>
    %53 = arith.mulf %51, %35 : vector<1x128xf32>
    %54 = arith.mulf %50, %49 : vector<1x128xf32>
    %55 = arith.addf %53, %54 : vector<1x128xf32>
    %56 = math.tanh %55 : vector<1x128xf32>
    %57 = arith.mulf %52, %56 : vector<1x128xf32>
    %c1_27 = arith.constant 1 : index
    %c0_28 = arith.constant 0 : index
    %58 = vector.load %arg7[%c1_27, %c0_28] : memref<2x128xf32, #tpu.memory_space<vmem>>, vector<1x128xf32>
    tpu.vector_store %arg7[%c1_27, %c0_28], %57 {strides = array<i32>} : memref<2x128xf32, #tpu.memory_space<vmem>>, vector<1x128xf32>,
    %c1_29 = arith.constant 1 : index
    %c0_30 = arith.constant 0 : index
    %59 = vector.load %arg8[%c1_29, %c0_30] : memref<2x128xf32, #tpu.memory_space<vmem>>, vector<1x128xf32>
    tpu.vector_store %arg8[%c1_29, %c0_30], %55 {strides = array<i32>} : memref<2x128xf32, #tpu.memory_space<vmem>>, vector<1x128xf32>,
    %c128 = arith.constant 128 : index
    %c0_31 = arith.constant 0 : index
    %60 = vector.load %arg3[%c128, %c0_31] : memref<384x128xbf16, #tpu.memory_space<vmem>>, vector<128x128xbf16>
    %61 = arith.truncf %57 : vector<1x128xf32> to vector<1x128xbf16>
    %cst_32 = arith.constant dense<0.000000e+00> : vector<1x128xf32>
    %62 = tpu.matmul %61, %60, %cst_32 {dimension_numbers = #tpu.dot_dimension_numbers<[1], [0], [0], [1], [0, 0, 1, 1], [], []>} : vector<1x128xbf16>, vector<128x128xbf16>, vector<1x128xf32> -> vector<1x128xf32>
    %c3 = arith.constant 3 : index
    %c0_33 = arith.constant 0 : index
    %63 = vector.load %arg5[%c3, %c0_33] : memref<5x512xf32, #tpu.memory_space<vmem>>, vector<1x128xf32>
    %64 = arith.addf %62, %63 : vector<1x128xf32>
    %cst_34 = arith.constant 0.000000e+00 : f32
    %65 = vector.broadcast %cst_34 : f32 to vector<1x128xf32>
    %66 = arith.maximumf %64, %65 : vector<1x128xf32>
    %c256_35 = arith.constant 256 : index
    %c0_36 = arith.constant 0 : index
    %67 = vector.load %arg3[%c256_35, %c0_36] : memref<384x128xbf16, #tpu.memory_space<vmem>>, vector<128x128xbf16>
    %68 = arith.truncf %66 : vector<1x128xf32> to vector<1x128xbf16>
    %cst_37 = arith.constant dense<0.000000e+00> : vector<1x128xf32>
    %69 = tpu.matmul %68, %67, %cst_37 {dimension_numbers = #tpu.dot_dimension_numbers<[1], [0], [0], [1], [0, 0, 1, 1], [], []>} : vector<1x128xbf16>, vector<128x128xbf16>, vector<1x128xf32> -> vector<1x128xf32>
    %c4 = arith.constant 4 : index
    %c0_38 = arith.constant 0 : index
    %70 = vector.load %arg5[%c4, %c0_38] : memref<5x512xf32, #tpu.memory_space<vmem>>, vector<1x128xf32>
    %71 = arith.addf %69, %70 : vector<1x128xf32>
    %72 = arith.negf %71 : vector<1x128xf32>
    %73 = math.exp %72 : vector<1x128xf32>
    %cst_39 = arith.constant 1.000000e+00 : f32
    %74 = vector.broadcast %cst_39 : f32 to vector<1x128xf32>
    %75 = arith.addf %74, %73 : vector<1x128xf32>
    %76 = arith.divf %74, %75 : vector<1x128xf32>
    %c0_40 = arith.constant 0 : index
    %c0_41 = arith.constant 0 : index
    %77 = vector.load %arg6[%c0_40, %c0_41] : memref<1x128xf32, #tpu.memory_space<vmem>>, vector<1x128xf32>
    tpu.vector_store %arg6[%c0_40, %c0_41], %76 {strides = array<i32>} : memref<1x128xf32, #tpu.memory_space<vmem>>, vector<1x128xf32>,
    return
  }
}

</mosaic_0001>

<bundles_post_ra>
// kernel: tpu_custom_call.1
= control target key start
LH: loop header
LB: loop body
LE: loop exit
PB: predicated region body
PF: predicated region fallthrough
CT: control target
= control target key end

     0   :  { %14 = vsyncpa [#allocation3], 0  ;;  %s2371_s0 = inlined_call_operand.hbm [shape: f32[1,128], index: 0, kind: input, shape index: {}]   ;;  %s2372_s1 = inlined_call_operand.vmem [shape: f32[2,128], index: 1, kind: input, shape index: {}]   ;;  %s2373_s2 = inlined_call_operand.vmem [shape: f32[2,128], index: 2, kind: input, shape index: {}]   ;;  %s2374_s3 = inlined_call_operand.hbm [shape: bf16[384,128], index: 3, kind: input, shape index: {}]   ;;  %s2375_s4 = inlined_call_operand.hbm [shape: bf16[512,512], index: 4, kind: input, shape index: {}]   ;;  %s2376_s5 = inlined_call_operand.hbm [shape: f32[5,512], index: 5, kind: input, shape index: {}]   ;;  %s2377_s6 = inlined_call_operand.hbm [shape: f32[1,128], index: 6, kind: output, shape index: {0}]   ;;  %s2378_s7 = inlined_call_operand.hbm [shape: f32[2,128], index: 7, kind: output, shape index: {1}]   ;;  %s2379_s8 = inlined_call_operand.hbm [shape: f32[2,128], index: 8, kind: output, shape index: {2}]  }
   0x1   :  { %15 = vsyncpa [#allocation6], 0 }
   0x2   :  { %16 = vsyncpa [#allocation9], 0 }
   0x3   :  { %17 = vsyncpa [#allocation4], 0 }
   0x4   :  { %18 = vsyncpa [#allocation12], 0  ;;  %s2165_s27 = smov [#allocation5]   ;;  %s2001_s9 = scalar_lea.hbm %s2374_s3, 3072 }
   0x5   :  { %s38_s28 = sshll.u32 %s2165_s27, 4  ;;  %p2002_p0 = scmp.ne.s32.totalorder %s2374_s3, %s2001_s9  ;;  %s39_s28 = int_to_ptr.vmem [resolvable:$true] %s38_s28 }
   0x6   :  { %p2005_p1 = scmp.lt.u32.totalorder %s2001_s9, %s2374_s3 }
   0x8   :  { %p2007_p2 = pnand %p2005_p1, %p2002_p0 }
   0xa   :  { %2010 = shalt.err (!%p2007_p2)
}
   0xb   :  { %s2011_s14 = scalar_lea.vmem %s39_s28, 3072  ;;  %p2016_p4 = scmp.lt.s32.totalorder %s39_s28, %s39_s28 }
   0xc   :  { %p2012_p3 = scmp.ne.s32.totalorder %s39_s28, %s2011_s14  ;;  %p2017_p5 = scmp.lt.s32.totalorder %s2011_s14, %s2011_s14 }
   0xe   :  { %p2018_p6 = por %p2017_p5, %p2016_p4 }
  0x10   :  { %p2019_p7 = pnand %p2018_p6, %p2012_p3 }
  0x12   :  { %2022 = shalt.err (!%p2019_p7)
}
  0x13   :  { %s2166_s15 = smov 64   ;;  %s2167_s16 = smov 4  }
  0x14   :  { %44 = dma.hbm_to_vmem [thread:$0]  %s2374_s3, 3072, %s39_s28, [#allocation6], %s2166_s15, %s2166_s15, %s2167_s16  }
  0x15   :  { %s2168_s19 = smov [#allocation2]   ;;  %s2169_s21 = smov [#allocation7]  }
  0x16   :  { %s25_s20 = sshll.u32 %s2168_s19, 4  ;;  %s50_s22 = sshll.u32 %s2169_s21, 4  ;;  %s26_s20 = int_to_ptr.vmem [resolvable:$true] %s25_s20  ;;  %s51_s22 = int_to_ptr.vmem [resolvable:$true] %s50_s22 }
  0x17   :  { %s2023_s25 = scalar_lea.hbm %s2371_s0, 16 }
  0x18   :  { %p2024_p8 = scmp.ne.s32.totalorder %s2371_s0, %s2023_s25  ;;  %p2027_p9 = scmp.lt.u32.totalorder %s2023_s25, %s2371_s0 }
  0x1a   :  { %p2029_p10 = pnand %p2027_p9, %p2024_p8 }
  0x1c   :  { %2032 = shalt.err (!%p2029_p10)
}
  0x1d   :  { %s2033_s3 = scalar_lea.vmem %s26_s20, 16  ;;  %s2037_s28 = scalar_lea.vmem %s26_s20, 32 }
  0x1e   :  { %p2034_p11 = scmp.ne.s32.totalorder %s26_s20, %s2033_s3  ;;  %p2038_p12 = scmp.lt.s32.totalorder %s26_s20, %s26_s20 }
  0x1f   :  { %p2039_p13 = scmp.lt.s32.totalorder %s2037_s28, %s2033_s3 }
  0x21   :  { %p2040_p0 = por %p2039_p13, %p2038_p12 }
  0x23   :  { %p2041_p1 = pnand %p2040_p0, %p2034_p11 }
  0x25   :  { %2044 = shalt.err (!%p2041_p1)
}
  0x26   :  { %28 = dma.hbm_to_vmem [thread:$0]  %s2371_s0, 16, %s26_s20, [#allocation3]  }
  0x27   :  { %s2045_s13 = scalar_lea.hbm %s2375_s4, 16384 }
  0x28   :  { %p2046_p2 = scmp.ne.s32.totalorder %s2375_s4, %s2045_s13  ;;  %p2049_p3 = scmp.lt.u32.totalorder %s2045_s13, %s2375_s4 }
  0x2a   :  { %p2051_p4 = pnand %p2049_p3, %p2046_p2 }
  0x2c   :  { %2054 = shalt.err (!%p2051_p4)
}
  0x2d   :  { %s2055_s18 = scalar_lea.vmem %s51_s22, 16384  ;;  %p2060_p6 = scmp.lt.s32.totalorder %s51_s22, %s51_s22 }
  0x2e   :  { %p2056_p5 = scmp.ne.s32.totalorder %s51_s22, %s2055_s18  ;;  %p2061_p7 = scmp.lt.s32.totalorder %s2055_s18, %s2055_s18 }
  0x30   :  { %p2062_p8 = por %p2061_p7, %p2060_p6 }
  0x32   :  { %p2063_p9 = pnand %p2062_p8, %p2056_p5 }
  0x34   :  { %2066 = shalt.err (!%p2063_p9)
}
  0x35   :  { %s2170_s0 = smov 256   ;;  %s2171_s19 = smov 16  }
  0x36   :  { %56 = dma.hbm_to_vmem [thread:$0]  %s2375_s4, 16384, %s51_s22, [#allocation6], %s2170_s0, %s2170_s0, %s2171_s19  }
  0x37   :  { %s2172_s23 = smov [#allocation8]   ;;  %s2067_s27 = scalar_lea.hbm %s2376_s5, 512 }
  0x38   :  { %s63_s24 = sshll.u32 %s2172_s23, 4  ;;  %p2068_p10 = scmp.ne.s32.totalorder %s2376_s5, %s2067_s27  ;;  %s64_s24 = int_to_ptr.vmem [resolvable:$true] %s63_s24 }
  0x39   :  { %p2071_p11 = scmp.lt.u32.totalorder %s2067_s27, %s2376_s5 }
  0x3b   :  { %p2073_p12 = pnand %p2071_p11, %p2068_p10 }
  0x3d   :  { %2076 = shalt.err (!%p2073_p12)
}
  0x3e   :  { %s2077_s9 = scalar_lea.vmem %s64_s24, 512  ;;  %p2082_p0 = scmp.lt.s32.totalorder %s64_s24, %s64_s24 }
  0x3f   :  { %p2078_p13 = scmp.ne.s32.totalorder %s64_s24, %s2077_s9  ;;  %p2083_p1 = scmp.lt.s32.totalorder %s2077_s9, %s2077_s9 }
  0x41   :  { %p2084_p2 = por %p2083_p1, %p2082_p0 }
  0x43   :  { %p2085_p3 = pnand %p2084_p2, %p2078_p13 }
  0x45   :  { %2088 = shalt.err (!%p2085_p3)
}
  0x46   :  { %66 = dma.hbm_to_vmem [thread:$0]  %s2376_s5, 512, %s64_s24, [#allocation9]  }
  0x47   :  { %2155 = dma.done.wait [#allocation3], 16  }
  0x48   :  { %2156 = vsyncadd [#allocation3], 4294967280 }
  0x49   :  { %2157 = dma.done.wait [#allocation6], 19456  }
  0x4a   :  { %2158 = vsyncadd [#allocation6], 4294947840 }
  0x4b   :  { %2159 = dma.done.wait [#allocation9], 512  }
  0x4c   :  { %2160 = vsyncadd [#allocation9], 4294966784  ;;  %v2173_v0 = vmov 0.0   ;;  %vm2174_vm0 = vmmov 0   ;;  %v1749_v1 = vld [vmem:[#allocation5] sm:$0xff]   ;;  %v1750_v2 = vld [vmem:[#allocation5 + $0x8] sm:$0xff]  }
  0x4d   :  { %1676 = vmatprep.subr.bf16.mxu0 %v2173_v0  ;;  %1692 = vmatprep.mubr.msk.bf16.mxu0 %vm2174_vm0, %v2173_v0  ;;  %v1751_v3 = vld [vmem:[#allocation5 + $0x10] sm:$0xff]   ;;  %v1752_v5 = vld [vmem:[#allocation5 + $0x18] sm:$0xff]   ;;  %v1753_v8 = vld [vmem:[#allocation5 + $0x20] sm:$0xff]  }
  0x4e   :  { %1677 = vmatpush3.bf16.msra.mxu0 %v1749_v1  ;;  %v1757_v4 = vld [vmem:[#allocation7 + $0x4] ss:$16 sps:$4 sm:$0xff]   ;;  %v1762_v6 = vld [vmem:[#allocation7] ss:$16 sps:$4 sm:$0xff]   ;;  %v1754_v13 = vld [vmem:[#allocation5 + $0x28] sm:$0xff]  }
  0x4f   :  { %1678 = vmatprep.subr.bf16.mxu0 %v2173_v0  ;;  %599 = vmatprep.subr.bf16.mxu1 %v1757_v4  ;;  %v1763_v7 = vld [vmem:[#allocation7 + $0x24] ss:$16 sps:$4 sm:$0xff]   ;;  %v1768_v9 = vld [vmem:[#allocation7 + $0x20] ss:$16 sps:$4 sm:$0xff]   ;;  %v1756_v19 = vld [vmem:[#allocation5 + $0x38] sm:$0xff]  }
  0x50   :  { %600 = vmatpush1.bf16.msra.mxu1 %v1762_v6  ;;  %v1769_v10 = vld [vmem:[#allocation7 + $0x44] ss:$16 sps:$4 sm:$0xff]   ;;  %v1774_v11 = vld [vmem:[#allocation7 + $0x40] ss:$16 sps:$4 sm:$0xff]   ;;  %v80_v20 = vld [vmem:[#allocation2] sm:$0x1] }
  0x51   :  { %601 = vmatprep.subr.bf16.mxu1 %v1763_v7  ;;  %v1775_v12 = vld [vmem:[#allocation7 + $0x64] ss:$16 sps:$4 sm:$0xff]   ;;  %v1780_v14 = vld [vmem:[#allocation7 + $0x60] ss:$16 sps:$4 sm:$0xff]   ;;  %v1761_v21 = vld [vmem:[#allocation7 + $0xc] ss:$16 sps:$4 sm:$0xff]   ;;  %v97_v23 = vpack.c.bf16 %v80_v20, %v80_v20 }
  0x52   :  { %1679 = vmatpush3.bf16.msra.mxu0 %v1750_v2  ;;  %v1781_v15 = vld [vmem:[#allocation7 + $0x84] ss:$16 sps:$4 sm:$0xff]   ;;  %v1786_v17 = vld [vmem:[#allocation7 + $0x80] ss:$16 sps:$4 sm:$0xff]   ;;  %v1759_v25 = vld [vmem:[#allocation7 + $0x8] ss:$16 sps:$4 sm:$0xff]  }
  0x53   :  { %1680 = vmatprep.subr.bf16.mxu0 %v2173_v0  ;;  %v1755_v16 = vld [vmem:[#allocation5 + $0x30] sm:$0xff]   ;;  %v1767_v26 = vld [vmem:[#allocation7 + $0x2c] ss:$16 sps:$4 sm:$0xff]   ;;  %v1765_v29 = vld [vmem:[#allocation7 + $0x28] ss:$16 sps:$4 sm:$0xff]  }
  0x54   :  { %602 = vmatpush1.bf16.msra.mxu1 %v1768_v9  ;;  %v1787_v18 = vld [vmem:[#allocation7 + $0xa4] ss:$16 sps:$4 sm:$0xff]   ;;  %v1792_v22 = vld [vmem:[#allocation7 + $0xa0] ss:$16 sps:$4 sm:$0xff]   ;;  %v1773_v30 = vld [vmem:[#allocation7 + $0x4c] ss:$16 sps:$4 sm:$0xff]  }
  0x55   :  { %603 = vmatprep.subr.bf16.mxu1 %v1769_v10  ;;  %v1793_v24 = vld [vmem:[#allocation7 + $0xc4] ss:$16 sps:$4 sm:$0xff]   ;;  %v1798_v27 = vld [vmem:[#allocation7 + $0xc0] ss:$16 sps:$4 sm:$0xff]   ;;  %v1771_v33 = vld [vmem:[#allocation7 + $0x48] ss:$16 sps:$4 sm:$0xff]  }
  0x56   :  { %1681 = vmatpush3.bf16.msra.mxu0 %v1751_v3  ;;  %v1799_v28 = vld [vmem:[#allocation7 + $0xe4] ss:$16 sps:$4 sm:$0xff]   ;;  %v1804_v31 = vld [vmem:[#allocation7 + $0xe0] ss:$16 sps:$4 sm:$0xff]   ;;  %v1779_v34 = vld [vmem:[#allocation7 + $0x6c] ss:$16 sps:$4 sm:$0xff]  }
  0x57   :  { %1682 = vmatprep.subr.bf16.mxu0 %v2173_v0  ;;  %v1805_v32 = vld [vmem:[#allocation7 + $0x104] ss:$16 sps:$4 sm:$0xff]   ;;  %v1810_v35 = vld [vmem:[#allocation7 + $0x100] ss:$16 sps:$4 sm:$0xff]   ;;  %v1777_v37 = vld [vmem:[#allocation7 + $0x68] ss:$16 sps:$4 sm:$0xff]  }
  0x58   :  { %604 = vmatpush1.bf16.msra.mxu1 %v1774_v11  ;;  %v1811_v36 = vld [vmem:[#allocation7 + $0x124] ss:$16 sps:$4 sm:$0xff]   ;;  %v1785_v38 = vld [vmem:[#allocation7 + $0x8c] ss:$16 sps:$4 sm:$0xff]   ;;  %v1816_v39 = vld [vmem:[#allocation7 + $0x120] ss:$16 sps:$4 sm:$0xff]  }
  0x59   :  { %605 = vmatprep.subr.bf16.mxu1 %v1775_v12  ;;  %v1817_v40 = vld [vmem:[#allocation7 + $0x144] ss:$16 sps:$4 sm:$0xff]   ;;  %v1783_v41 = vld [vmem:[#allocation7 + $0x88] ss:$16 sps:$4 sm:$0xff]   ;;  %v1791_v42 = vld [vmem:[#allocation7 + $0xac] ss:$16 sps:$4 sm:$0xff]  }
  0x5a   :  { %1683 = vmatpush3.bf16.msra.mxu0 %v1752_v5  ;;  %v1822_v43 = vld [vmem:[#allocation7 + $0x140] ss:$16 sps:$4 sm:$0xff]   ;;  %v1789_v44 = vld [vmem:[#allocation7 + $0xa8] ss:$16 sps:$4 sm:$0xff]   ;;  %v1823_v45 = vld [vmem:[#allocation7 + $0x164] ss:$16 sps:$4 sm:$0xff]  }
  0x5b   :  { %1684 = vmatprep.subr.bf16.mxu0 %v2173_v0  ;;  %v1797_v46 = vld [vmem:[#allocation7 + $0xcc] ss:$16 sps:$4 sm:$0xff]   ;;  %v1828_v47 = vld [vmem:[#allocation7 + $0x160] ss:$16 sps:$4 sm:$0xff]   ;;  %v1829_v48 = vld [vmem:[#allocation7 + $0x184] ss:$16 sps:$4 sm:$0xff]  }
  0x5c   :  { %606 = vmatpush1.bf16.msra.mxu1 %v1780_v14  ;;  %v1795_v49 = vld [vmem:[#allocation7 + $0xc8] ss:$16 sps:$4 sm:$0xff]   ;;  %v1803_v50 = vld [vmem:[#allocation7 + $0xec] ss:$16 sps:$4 sm:$0xff]   ;;  %v1834_v51 = vld [vmem:[#allocation7 + $0x180] ss:$16 sps:$4 sm:$0xff]  }
  0x5d   :  { %607 = vmatprep.subr.bf16.mxu1 %v1781_v15  ;;  %v1835_v52 = vld [vmem:[#allocation7 + $0x1a4] ss:$16 sps:$4 sm:$0xff]   ;;  %v1801_v53 = vld [vmem:[#allocation7 + $0xe8] ss:$16 sps:$4 sm:$0xff]   ;;  %v1809_v54 = vld [vmem:[#allocation7 + $0x10c] ss:$16 sps:$4 sm:$0xff]  }
  0x5e   :  { %1685 = vmatpush3.bf16.msra.mxu0 %v1753_v8  ;;  %v1840_v55 = vld [vmem:[#allocation7 + $0x1a0] ss:$16 sps:$4 sm:$0xff]   ;;  %v1841_v56 = vld [vmem:[#allocation7 + $0x1c4] ss:$16 sps:$4 sm:$0xff]   ;;  %v1807_v57 = vld [vmem:[#allocation7 + $0x108] ss:$16 sps:$4 sm:$0xff]  }
  0x5f   :  { %1686 = vmatprep.subr.bf16.mxu0 %v2173_v0  ;;  %v1815_v58 = vld [vmem:[#allocation7 + $0x12c] ss:$16 sps:$4 sm:$0xff]   ;;  %v1813_v59 = vld [vmem:[#allocation7 + $0x128] ss:$16 sps:$4 sm:$0xff]   ;;  %v1846_v7 = vld [vmem:[#allocation7 + $0x1c0] ss:$16 sps:$4 sm:$0xff]  }
  0x60   :  { %608 = vmatpush1.bf16.msra.mxu1 %v1786_v17  ;;  %v1821_v60 = vld [vmem:[#allocation7 + $0x14c] ss:$16 sps:$4 sm:$0xff]   ;;  %v1819_v61 = vld [vmem:[#allocation7 + $0x148] ss:$16 sps:$4 sm:$0xff]   ;;  %v1847_v8 = vld [vmem:[#allocation7 + $0x1e4] ss:$16 sps:$4 sm:$0xff]  }
  0x61   :  { %609 = vmatprep.subr.bf16.mxu1 %v1787_v18  ;;  %v1827_v62 = vld [vmem:[#allocation7 + $0x16c] ss:$16 sps:$4 sm:$0xff]   ;;  %v1825_v63 = vld [vmem:[#allocation7 + $0x168] ss:$16 sps:$4 sm:$0xff]   ;;  %v1852_v11 = vld [vmem:[#allocation7 + $0x1e0] ss:$16 sps:$4 sm:$0xff]  }
  0x62   :  { %1687 = vmatpush3.bf16.msra.mxu0 %v1754_v13  ;;  %v1833_v1 = vld [vmem:[#allocation7 + $0x18c] ss:$16 sps:$4 sm:$0xff]   ;;  %v1831_v2 = vld [vmem:[#allocation7 + $0x188] ss:$16 sps:$4 sm:$0xff]   ;;  %v1855_v14 = vld [vmem:[#allocation7 + $0x204] ss:$16 sps:$4 sm:$0xff]  }
  0x63   :  { %1688 = vmatprep.subr.bf16.mxu0 %v2173_v0  ;;  %v1839_v3 = vld [vmem:[#allocation7 + $0x1ac] ss:$16 sps:$4 sm:$0xff]   ;;  %v1837_v4 = vld [vmem:[#allocation7 + $0x1a8] ss:$16 sps:$4 sm:$0xff]  }
  0x64   :  { %610 = vmatpush1.bf16.msra.mxu1 %v1792_v22  ;;  %v1845_v5 = vld [vmem:[#allocation7 + $0x1cc] ss:$16 sps:$4 sm:$0xff]   ;;  %v1843_v6 = vld [vmem:[#allocation7 + $0x1c8] ss:$16 sps:$4 sm:$0xff]  }
  0x65   :  { %611 = vmatprep.subr.bf16.mxu1 %v1793_v24  ;;  %v1851_v9 = vld [vmem:[#allocation7 + $0x1ec] ss:$16 sps:$4 sm:$0xff]   ;;  %v1849_v10 = vld [vmem:[#allocation7 + $0x1e8] ss:$16 sps:$4 sm:$0xff]  }
  0x66   :  { %1689 = vmatpush3.bf16.msra.mxu0 %v1755_v16  ;;  %v188_v12 = vld [vmem:[%s2372_s1] sm:$0x1]  ;;  %v98_v16 = vld [vmem:[#allocation8] ss:$0 sm:$0xff]  ;;  %v1856_v24 = vld [vmem:[#allocation7 + $0x208] ss:$16 sps:$4 sm:$0xff]  }
  0x67   :  { %1690 = vmatprep.subr.bf16.mxu0 %v2173_v0  ;;  %v255_v13 = vpack.c.bf16 %v188_v12, %v188_v12  ;;  %v1858_v15 = vld [vmem:[#allocation7 + $0x20c] ss:$16 sps:$4 sm:$0xff]   ;;  %v1933_v12 = vld [vmem:[#allocation7 + $0x3a4] ss:$16 sps:$4 sm:$0xff]  }
  0x68   :  { %612 = vmatpush1.bf16.msra.mxu1 %v1798_v27  ;;  %v1864_v27 = vld [vmem:[#allocation7 + $0x22c] ss:$16 sps:$4 sm:$0xff]  }
  0x69   :  { %613 = vmatprep.subr.bf16.mxu1 %v1799_v28  ;;  %631 = vmatprep.mubr.bf16.mxu1 %v255_v13  ;;  %v1859_v28 = vld [vmem:[#allocation7 + $0x220] ss:$16 sps:$4 sm:$0xff]  }
  0x6a   :  { %1691 = vmatpush3.bf16.msra.mxu0 %v1756_v19 }
  0x6b   :  { %640 = vmatprep.subr.bf16.mxu0 %v1761_v21 }
  0x6c   :  { %614 = vmatpush1.bf16.msra.mxu1 %v1804_v31  ;;  %v1870_v31 = vld [vmem:[#allocation7 + $0x24c] ss:$16 sps:$4 sm:$0xff]  }
  0x6d   :  { %1693 = vmatmul.mubr.bf16.vlgmr.msra.gmra.mrb[0].mxu0 %v97_v23  ;;  %615 = vmatprep.subr.bf16.mxu1 %v1805_v32  ;;  %v1853_v23 = vld [vmem:[#allocation7 + $0x200] ss:$16 sps:$4 sm:$0xff]  }
  0x6e   :  { %641 = vmatpush1.bf16.msra.mxu0 %v1759_v25  ;;  %672 = vmatprep.mubr.bf16.mxu0 %v255_v13  ;;  %v1865_v32 = vld [vmem:[#allocation7 + $0x240] ss:$16 sps:$4 sm:$0xff]   ;;  %v1934_v13 = vld [vmem:[#allocation7 + $0x3a8] ss:$16 sps:$4 sm:$0xff]  }
  0x6f   :  { %642 = vmatprep.subr.bf16.mxu0 %v1767_v26  ;;  %v1861_v26 = vld [vmem:[#allocation7 + $0x224] ss:$16 sps:$4 sm:$0xff]  }
  0x70   :  { %616 = vmatpush1.bf16.msra.mxu1 %v1810_v35  ;;  %v1876_v35 = vld [vmem:[#allocation7 + $0x26c] ss:$16 sps:$4 sm:$0xff]  }
  0x71   :  { %617 = vmatprep.subr.bf16.mxu1 %v1811_v36  ;;  %v1871_v36 = vld [vmem:[#allocation7 + $0x260] ss:$16 sps:$4 sm:$0xff]  }
  0x72   :  { %643 = vmatpush1.bf16.msra.mxu0 %v1765_v29  ;;  %v1862_v29 = vld [vmem:[#allocation7 + $0x228] ss:$16 sps:$4 sm:$0xff]  }
  0x73   :  { %644 = vmatprep.subr.bf16.mxu0 %v1773_v30  ;;  %v1867_v30 = vld [vmem:[#allocation7 + $0x244] ss:$16 sps:$4 sm:$0xff]  }
  0x74   :  { %618 = vmatpush1.bf16.msra.mxu1 %v1816_v39  ;;  %v1882_v39 = vld [vmem:[#allocation7 + $0x28c] ss:$16 sps:$4 sm:$0xff]  }
  0x75   :  { %619 = vmatprep.subr.bf16.mxu1 %v1817_v40  ;;  %v1877_v40 = vld [vmem:[#allocation7 + $0x280] ss:$16 sps:$4 sm:$0xff]  }
  0x76   :  { %645 = vmatpush1.bf16.msra.mxu0 %v1771_v33  ;;  %v1868_v33 = vld [vmem:[#allocation7 + $0x248] ss:$16 sps:$4 sm:$0xff]  }
  0x77   :  { %646 = vmatprep.subr.bf16.mxu0 %v1779_v34  ;;  %v1873_v34 = vld [vmem:[#allocation7 + $0x264] ss:$16 sps:$4 sm:$0xff]  }
  0x78   :  { %620 = vmatpush1.bf16.msra.mxu1 %v1822_v43  ;;  %v1888_v43 = vld [vmem:[#allocation7 + $0x2ac] ss:$16 sps:$4 sm:$0xff]  }
  0x79   :  { %621 = vmatprep.subr.bf16.mxu1 %v1823_v45  ;;  %v1886_v45 = vld [vmem:[#allocation7 + $0x2a8] ss:$16 sps:$4 sm:$0xff]  }
  0x7a   :  { %647 = vmatpush1.bf16.msra.mxu0 %v1777_v37  ;;  %v1874_v37 = vld [vmem:[#allocation7 + $0x268] ss:$16 sps:$4 sm:$0xff]  }
  0x7b   :  { %648 = vmatprep.subr.bf16.mxu0 %v1785_v38  ;;  %v1879_v38 = vld [vmem:[#allocation7 + $0x284] ss:$16 sps:$4 sm:$0xff]  }
  0x7c   :  { %622 = vmatpush1.bf16.msra.mxu1 %v1828_v47  ;;  %v1894_v47 = vld [vmem:[#allocation7 + $0x2cc] ss:$16 sps:$4 sm:$0xff]  }
  0x7d   :  { %623 = vmatprep.subr.bf16.mxu1 %v1829_v48  ;;  %v1889_v48 = vld [vmem:[#allocation7 + $0x2c0] ss:$16 sps:$4 sm:$0xff]  }
  0x7e   :  { %649 = vmatpush1.bf16.msra.mxu0 %v1783_v41  ;;  %v1880_v41 = vld [vmem:[#allocation7 + $0x288] ss:$16 sps:$4 sm:$0xff]  }
  0x7f   :  { %650 = vmatprep.subr.bf16.mxu0 %v1791_v42  ;;  %v1885_v42 = vld [vmem:[#allocation7 + $0x2a4] ss:$16 sps:$4 sm:$0xff]  }
  0x80   :  { %624 = vmatpush1.bf16.msra.mxu1 %v1834_v51  ;;  %v1900_v51 = vld [vmem:[#allocation7 + $0x2ec] ss:$16 sps:$4 sm:$0xff]  }
  0x81   :  { %625 = vmatprep.subr.bf16.mxu1 %v1835_v52  ;;  %v1895_v52 = vld [vmem:[#allocation7 + $0x2e0] ss:$16 sps:$4 sm:$0xff]  }
  0x82   :  { %651 = vmatpush1.bf16.msra.mxu0 %v1789_v44  ;;  %v1883_v44 = vld [vmem:[#allocation7 + $0x2a0] ss:$16 sps:$4 sm:$0xff]  }
  0x83   :  { %652 = vmatprep.subr.bf16.mxu0 %v1797_v46  ;;  %v1891_v46 = vld [vmem:[#allocation7 + $0x2c4] ss:$16 sps:$4 sm:$0xff]  }
  0x84   :  { %626 = vmatpush1.bf16.msra.mxu1 %v1840_v55  ;;  %v1906_v55 = vld [vmem:[#allocation7 + $0x30c] ss:$16 sps:$4 sm:$0xff]  }
  0x85   :  { %627 = vmatprep.subr.bf16.mxu1 %v1841_v56  ;;  %v1901_v56 = vld [vmem:[#allocation7 + $0x300] ss:$16 sps:$4 sm:$0xff]  }
  0x86   :  { %653 = vmatpush1.bf16.msra.mxu0 %v1795_v49  ;;  %v1892_v49 = vld [vmem:[#allocation7 + $0x2c8] ss:$16 sps:$4 sm:$0xff]  }
  0x87   :  { %654 = vmatprep.subr.bf16.mxu0 %v1803_v50  ;;  %v1897_v50 = vld [vmem:[#allocation7 + $0x2e4] ss:$16 sps:$4 sm:$0xff]  }
  0x88   :  { %628 = vmatpush1.bf16.msra.mxu1 %v1846_v7  ;;  %v1927_v7 = vld [vmem:[#allocation7 + $0x384] ss:$16 sps:$4 sm:$0xff]  }
  0x89   :  { %629 = vmatprep.subr.bf16.mxu1 %v1847_v8  ;;  %v1930_v8 = vld [vmem:[#allocation7 + $0x38c] ss:$16 sps:$4 sm:$0xff]  }
  0x8a   :  { %655 = vmatpush1.bf16.msra.mxu0 %v1801_v53  ;;  %v1898_v53 = vld [vmem:[#allocation7 + $0x2e8] ss:$16 sps:$4 sm:$0xff]  }
  0x8b   :  { %656 = vmatprep.subr.bf16.mxu0 %v1809_v54  ;;  %v1903_v54 = vld [vmem:[#allocation7 + $0x304] ss:$16 sps:$4 sm:$0xff]  }
  0x8c   :  { %630 = vmatpush1.bf16.msra.mxu1 %v1852_v11  ;;  %v1931_v11 = vld [vmem:[#allocation7 + $0x3a0] ss:$16 sps:$4 sm:$0xff]  }
  0x8d   :  { %1118 = vmatprep.subr.bf16.mxu1 %v1855_v14  ;;  %v1936_v14 = vld [vmem:[#allocation7 + $0x3ac] ss:$16 sps:$4 sm:$0xff]  }
  0x8e   :  { %657 = vmatpush1.bf16.msra.mxu0 %v1807_v57  ;;  %v1904_v57 = vld [vmem:[#allocation7 + $0x308] ss:$16 sps:$4 sm:$0xff]  }
  0x8f   :  { %658 = vmatprep.subr.bf16.mxu0 %v1815_v58  ;;  %v1909_v58 = vld [vmem:[#allocation7 + $0x324] ss:$16 sps:$4 sm:$0xff]  }
  0x92   :  { %659 = vmatpush1.bf16.msra.mxu0 %v1813_v59  ;;  %v1912_v59 = vld [vmem:[#allocation7 + $0x32c] ss:$16 sps:$4 sm:$0xff]  }
  0x93   :  { %660 = vmatprep.subr.bf16.mxu0 %v1821_v60  ;;  %v1907_v60 = vld [vmem:[#allocation7 + $0x320] ss:$16 sps:$4 sm:$0xff]  }
  0x96   :  { %661 = vmatpush1.bf16.msra.mxu0 %v1819_v61  ;;  %v1910_v61 = vld [vmem:[#allocation7 + $0x328] ss:$16 sps:$4 sm:$0xff]  }
  0x97   :  { %662 = vmatprep.subr.bf16.mxu0 %v1827_v62  ;;  %v1915_v62 = vld [vmem:[#allocation7 + $0x344] ss:$16 sps:$4 sm:$0xff]  }
  0x9a   :  { %663 = vmatpush1.bf16.msra.mxu0 %v1825_v63  ;;  %v1918_v63 = vld [vmem:[#allocation7 + $0x34c] ss:$16 sps:$4 sm:$0xff]  }
  0x9b   :  { %664 = vmatprep.subr.bf16.mxu0 %v1833_v1  ;;  %v1913_v1 = vld [vmem:[#allocation7 + $0x340] ss:$16 sps:$4 sm:$0xff]  }
  0x9e   :  { %665 = vmatpush1.bf16.msra.mxu0 %v1831_v2  ;;  %v1916_v2 = vld [vmem:[#allocation7 + $0x348] ss:$16 sps:$4 sm:$0xff]  }
  0x9f   :  { %666 = vmatprep.subr.bf16.mxu0 %v1839_v3  ;;  %v1921_v3 = vld [vmem:[#allocation7 + $0x364] ss:$16 sps:$4 sm:$0xff]  }
  0xa2   :  { %667 = vmatpush1.bf16.msra.mxu0 %v1837_v4  ;;  %v1924_v4 = vld [vmem:[#allocation7 + $0x36c] ss:$16 sps:$4 sm:$0xff]  }
  0xa3   :  { %668 = vmatprep.subr.bf16.mxu0 %v1845_v5  ;;  %v1919_v5 = vld [vmem:[#allocation7 + $0x360] ss:$16 sps:$4 sm:$0xff]  }
  0xa6   :  { %669 = vmatpush1.bf16.msra.mxu0 %v1843_v6  ;;  %v1922_v6 = vld [vmem:[#allocation7 + $0x368] ss:$16 sps:$4 sm:$0xff]  }
  0xa7   :  { %670 = vmatprep.subr.bf16.mxu0 %v1851_v9  ;;  %v1925_v9 = vld [vmem:[#allocation7 + $0x380] ss:$16 sps:$4 sm:$0xff]  }
  0xaa   :  { %671 = vmatpush1.bf16.msra.mxu0 %v1849_v10  ;;  %v1928_v10 = vld [vmem:[#allocation7 + $0x388] ss:$16 sps:$4 sm:$0xff]  }
  0xab   :  { %1159 = vmatprep.subr.bf16.mxu0 %v1858_v15  ;;  %v1939_v15 = vld [vmem:[#allocation7 + $0x3c4] ss:$16 sps:$4 sm:$0xff]  }
 0x140   :  { %v181_v17 = vpop.f32.mrb[0].mxu0 }
 0x141   :  { %v182_v18 = vadd.f32 %v181_v17, %v98_v16  ;;  %v1694_v19 = vpop.f32.mrb[1].mxu0  ;;  %v1942_v16 = vld [vmem:[#allocation7 + $0x3cc] ss:$16 sps:$4 sm:$0xff]   ;;  %v1937_v17 = vld [vmem:[#allocation7 + $0x3c0] ss:$16 sps:$4 sm:$0xff]  }
 0x142   :  { %v184_v20 = vpop.f32.mrb[2].mxu0  ;;  %v707_v19 = vld [vmem:[%s2372_s1 + $0x1] sm:$0x1] }
 0x143   :  { %v187_v21 = vmax.f32 %v182_v18, 0.0  ;;  %v1695_v22 = vpop.f32.mrb[3].mxu0  ;;  %v1940_v18 = vld [vmem:[#allocation7 + $0x3c8] ss:$16 sps:$4 sm:$0xff]   ;;  %v1945_v20 = vld [vmem:[#allocation7 + $0x3e4] ss:$16 sps:$4 sm:$0xff]  }
 0x144   :  { %v774_v22 = vpack.c.bf16 %v707_v19, %v707_v19  ;;  %v776_v19 = vld [vmem:[#allocation8 + $0x2] ss:$8 sm:$0xf] }
 0x145   :  { %v254_v25 = vpack.c.bf16 %v187_v21, %v187_v21  ;;  %v1948_v21 = vld [vmem:[#allocation7 + $0x3ec] ss:$16 sps:$4 sm:$0xff]  }
 0x147   :  { %632 = vmatmul.mubr.bf16.vlgmr.msra.gmra.mrb[0].mxu1 %v254_v25  ;;  %673 = vmatmul.mubr.bf16.vlgmr.msra.gmra.mrb[4].mxu0 %v254_v25  ;;  %v579_v25 = vlaneseq }
 0x148   :  { %1119 = vmatpush1.bf16.msra.mxu1 %v1853_v23  ;;  %1160 = vmatpush1.bf16.msra.mxu0 %v1856_v24  ;;  %v1943_v23 = vld [vmem:[#allocation7 + $0x3e0] ss:$16 sps:$4 sm:$0xff]   ;;  %v1946_v24 = vld [vmem:[#allocation7 + $0x3e8] ss:$16 sps:$4 sm:$0xff]  }
 0x149   :  { %1120 = vmatprep.subr.bf16.mxu1 %v1861_v26  ;;  %1161 = vmatprep.subr.bf16.mxu0 %v1864_v27  ;;  %v2289_v26 = vshrl.u32 %v579_v25, 7 }
 0x14a   :  { %1150 = vmatprep.mubr.bf16.mxu1 %v774_v22  ;;  %1191 = vmatprep.mubr.bf16.mxu0 %v774_v22 }
 0x14b   :  { %v581_v27 = vsub.s32 0, %v2289_v26 }
 0x14c   :  { %1121 = vmatpush1.bf16.msra.mxu1 %v1859_v28  ;;  %1162 = vmatpush1.bf16.msra.mxu0 %v1862_v29  ;;  %v257_v28 = vld [vmem:[#allocation8 + $0x1] ss:$8 sm:$0xf]  ;;  %v585_v29 = vsub.s32 1, %v2289_v26 }
 0x14d   :  { %1122 = vmatprep.subr.bf16.mxu1 %v1867_v30  ;;  %1163 = vmatprep.subr.bf16.mxu0 %v1870_v31  ;;  %v582_v30 = vrot.slane %v257_v28, %v581_v27 }
 0x14e   :  { %v586_v31 = vrot.slane %v257_v28, %v585_v29 }
 0x150   :  { %1123 = vmatpush1.bf16.msra.mxu1 %v1865_v32  ;;  %1164 = vmatpush1.bf16.msra.mxu0 %v1868_v33 }
 0x151   :  { %1124 = vmatprep.subr.bf16.mxu1 %v1873_v34  ;;  %1165 = vmatprep.subr.bf16.mxu0 %v1876_v35  ;;  %v589_v35 = vsub.s32 2, %v2289_v26 }
 0x154   :  { %1125 = vmatpush1.bf16.msra.mxu1 %v1871_v36  ;;  %1166 = vmatpush1.bf16.msra.mxu0 %v1874_v37 }
 0x155   :  { %1126 = vmatprep.subr.bf16.mxu1 %v1879_v38  ;;  %1167 = vmatprep.subr.bf16.mxu0 %v1882_v39 }
 0x158   :  { %1127 = vmatpush1.bf16.msra.mxu1 %v1877_v40  ;;  %1168 = vmatpush1.bf16.msra.mxu0 %v1880_v41 }
 0x159   :  { %1128 = vmatprep.subr.bf16.mxu1 %v1885_v42  ;;  %1169 = vmatprep.subr.bf16.mxu0 %v1888_v43 }
 0x15c   :  { %1129 = vmatpush1.bf16.msra.mxu1 %v1883_v44  ;;  %1170 = vmatpush1.bf16.msra.mxu0 %v1886_v45  ;;  %v593_v45 = vsub.s32 3, %v2289_v26 }
 0x15d   :  { %1130 = vmatprep.subr.bf16.mxu1 %v1891_v46  ;;  %1171 = vmatprep.subr.bf16.mxu0 %v1894_v47  ;;  %v590_v46 = vrot.slane %v257_v28, %v589_v35 }
 0x15e   :  { %v594_v47 = vrot.slane %v257_v28, %v593_v45 }
 0x160   :  { %1131 = vmatpush1.bf16.msra.mxu1 %v1889_v48  ;;  %1172 = vmatpush1.bf16.msra.mxu0 %v1892_v49 }
 0x161   :  { %1132 = vmatprep.subr.bf16.mxu1 %v1897_v50  ;;  %1173 = vmatprep.subr.bf16.mxu0 %v1900_v51 }
 0x164   :  { %1133 = vmatpush1.bf16.msra.mxu1 %v1895_v52  ;;  %1174 = vmatpush1.bf16.msra.mxu0 %v1898_v53 }
 0x165   :  { %1134 = vmatprep.subr.bf16.mxu1 %v1903_v54  ;;  %1175 = vmatprep.subr.bf16.mxu0 %v1906_v55 }
 0x168   :  { %1135 = vmatpush1.bf16.msra.mxu1 %v1901_v56  ;;  %1176 = vmatpush1.bf16.msra.mxu0 %v1904_v57 }
 0x169   :  { %1136 = vmatprep.subr.bf16.mxu1 %v1909_v58  ;;  %1177 = vmatprep.subr.bf16.mxu0 %v1912_v59  ;;  %v189_v58 = vld [vmem:[%s2373_s2] sm:$0x1] }
 0x16c   :  { %1137 = vmatpush1.bf16.msra.mxu1 %v1907_v60  ;;  %1178 = vmatpush1.bf16.msra.mxu0 %v1910_v61 }
 0x16d   :  { %1138 = vmatprep.subr.bf16.mxu1 %v1915_v62  ;;  %1179 = vmatprep.subr.bf16.mxu0 %v1918_v63 }
 0x170   :  { %1139 = vmatpush1.bf16.msra.mxu1 %v1913_v1  ;;  %1180 = vmatpush1.bf16.msra.mxu0 %v1916_v2 }
 0x171   :  { %1140 = vmatprep.subr.bf16.mxu1 %v1921_v3  ;;  %1181 = vmatprep.subr.bf16.mxu0 %v1924_v4 }
 0x174   :  { %1141 = vmatpush1.bf16.msra.mxu1 %v1919_v5  ;;  %1182 = vmatpush1.bf16.msra.mxu0 %v1922_v6  ;;  %v1949_v5 = vld [vmem:[#allocation5 + $0x40] sm:$0xff]   ;;  %v1950_v6 = vld [vmem:[#allocation5 + $0x48] sm:$0xff]  }
 0x175   :  { %1142 = vmatprep.subr.bf16.mxu1 %v1927_v7  ;;  %1183 = vmatprep.subr.bf16.mxu0 %v1930_v8  ;;  %v1951_v7 = vld [vmem:[#allocation5 + $0x50] sm:$0xff]   ;;  %v1952_v8 = vld [vmem:[#allocation5 + $0x58] sm:$0xff]  }
 0x178   :  { %1143 = vmatpush1.bf16.msra.mxu1 %v1925_v9  ;;  %1184 = vmatpush1.bf16.msra.mxu0 %v1928_v10  ;;  %v1953_v9 = vld [vmem:[#allocation5 + $0x60] sm:$0xff]   ;;  %v1954_v10 = vld [vmem:[#allocation5 + $0x68] sm:$0xff]  }
 0x179   :  { %1144 = vmatprep.subr.bf16.mxu1 %v1933_v12  ;;  %1185 = vmatprep.subr.bf16.mxu0 %v1936_v14  ;;  %v1956_v12 = vld [vmem:[#allocation5 + $0x78] sm:$0xff]   ;;  %v1958_v14 = vld [vmem:[#allocation5 + $0x88] sm:$0xff]  }
 0x17c   :  { %1145 = vmatpush1.bf16.msra.mxu1 %v1931_v11  ;;  %1186 = vmatpush1.bf16.msra.mxu0 %v1934_v13  ;;  %v1955_v11 = vld [vmem:[#allocation5 + $0x70] sm:$0xff]   ;;  %v1957_v13 = vld [vmem:[#allocation5 + $0x80] sm:$0xff]  }
 0x17d   :  { %1146 = vmatprep.subr.bf16.mxu1 %v1939_v15  ;;  %1187 = vmatprep.subr.bf16.mxu0 %v1942_v16  ;;  %v1959_v15 = vld [vmem:[#allocation5 + $0x90] sm:$0xff]   ;;  %v1960_v16 = vld [vmem:[#allocation5 + $0x98] sm:$0xff]  }
 0x180   :  { %1147 = vmatpush1.bf16.msra.mxu1 %v1937_v17  ;;  %1188 = vmatpush1.bf16.msra.mxu0 %v1940_v18  ;;  %v1961_v17 = vld [vmem:[#allocation5 + $0xa0] sm:$0xff]   ;;  %v1962_v18 = vld [vmem:[#allocation5 + $0xa8] sm:$0xff]  }
 0x181   :  { %1148 = vmatprep.subr.bf16.mxu1 %v1945_v20  ;;  %1189 = vmatprep.subr.bf16.mxu0 %v1948_v21  ;;  %v1101_v20 = vrot.slane %v776_v19, %v581_v27  ;;  %v1105_v21 = vrot.slane %v776_v19, %v585_v29  ;;  %v1113_v27 = vrot.slane %v776_v19, %v593_v45 }
 0x184   :  { %1149 = vmatpush1.bf16.msra.mxu1 %v1943_v23  ;;  %1190 = vmatpush1.bf16.msra.mxu0 %v1946_v24 }
 0x185   :  { %1696 = vmatprep.subr.bf16.mxu1 %v2173_v0  ;;  %1716 = vmatprep.subr.bf16.mxu0 %v2173_v0 }
 0x21a   :  { %v633_v32 = vpop.f32.mrb[0].mxu1  ;;  %v674_v33 = vpop.f32.mrb[4].mxu0 }
 0x21b   :  { %v634_v34 = vadd.f32 %v633_v32, %v582_v30  ;;  %v635_v36 = vpop.f32.mrb[1].mxu1  ;;  %v676_v37 = vpop.f32.mrb[5].mxu0  ;;  %v675_v48 = vadd.f32 %v674_v33, %v590_v46 }
 0x21c   :  { %v636_v38 = vadd.f32 %v635_v36, %v586_v31  ;;  %v637_v39 = vpop.f32.mrb[2].mxu1  ;;  %v678_v40 = vpop.f32.mrb[6].mxu0  ;;  %v677_v49 = vadd.f32 %v676_v37, %v594_v47 }
 0x21d   :  { %v1562_v41 = vmul.f32 -1.442695, %v634_v34  ;;  %v638_v42 = vpop.f32.mrb[3].mxu1  ;;  %v679_v43 = vpop.f32.mrb[7].mxu0  ;;  %v1564_v50 = vmul.f32 -1.442695, %v675_v48 }
 0x21e   :  { %v1563_v44 = vmul.f32 -1.442695, %v636_v38  ;;  %v1109_v38 = vrot.slane %v776_v19, %v589_v35  ;;  %v708_v35 = vld [vmem:[%s2373_s2 + $0x1] sm:$0x1]  ;;  %s2175_s2 = smov [#allocation11]  }
 0x21f   :  { %1965 = vpow2.f32 %v1562_v41  ;;  %s1462_s16 = sshll.u32 %s2175_s2, 4  ;;  %s1463_s16 = int_to_ptr.vmem [resolvable:$true] %s1462_s16 }
 0x220   :  { %1967 = vpow2.f32 %v1563_v44  ;;  %s2089_s17 = scalar_lea.vmem %s1463_s16, 32  ;;  %p2094_p5 = scmp.lt.s32.totalorder %s1463_s16, %s1463_s16 }
 0x221   :  { %1969 = vtanh.f32 %v677_v49  ;;  %p2090_p4 = scmp.ne.s32.totalorder %s1463_s16, %s2089_s17  ;;  %p2095_p6 = scmp.lt.s32.totalorder %s2089_s17, %s2089_s17 }
 0x222   :  { %1971 = vpow2.f32 %v1564_v50 }
 0x223   :  { %p2096_p7 = por %p2095_p6, %p2094_p5 }
 0x225   :  { %p2097_p8 = pnand %p2096_p7, %p2090_p4 }
 0x229   :  { %v1966_v51 = vpop.eup %1965 }
 0x22a   :  { %v690_v52 = vadd.f32 1.0, %v1966_v51  ;;  %v1968_v53 = vpop.eup %1967 }
 0x22b   :  { %v691_v54 = vadd.f32 1.0, %v1968_v53  ;;  %v1970_v55 = vpop.eup %1969 }
 0x22c   :  { %1973 = vrcp.f32 %v690_v52  ;;  %v1972_v56 = vpop.eup %1971 }
 0x22d   :  { %1975 = vrcp.f32 %v691_v54  ;;  %v692_v61 = vadd.f32 1.0, %v1972_v56  ;;  %v1963_v56 = vld [vmem:[#allocation5 + $0xb0] sm:$0xff]  }
 0x22f   :  { %1977 = vrcp.f32 %v692_v61 }
 0x236   :  { %v1974_v57 = vpop.eup %1973 }
 0x237   :  { %v701_v59 = vmul.f32 %v1974_v57, %v1970_v55  ;;  %v1976_v60 = vpop.eup %1975  ;;  %v1964_v57 = vld [vmem:[#allocation5 + $0xb8] sm:$0xff]  }
 0x238   :  { %v700_v62 = vmul.f32 %v1976_v60, %v189_v58  ;;  %v1243_v58 = vld [vmem:[#allocation8 + $0x3] ss:$0 sm:$0xff] }
 0x239   :  { %v1978_v1 = vpop.eup %1977 }
 0x23a   :  { %v702_v63 = vadd.f32 %v701_v59, %v700_v62 }
 0x23c   :  { %1979 = vtanh.f32 %v702_v63  ;;  %706 = vst [vmem:[#allocation13] sm:$0x1] %v702_v63 }
 0x246   :  { %v1980_v2 = vpop.eup %1979 }
 0x247   :  { %v704_v3 = vmul.f32 %v1980_v2, %v1978_v1 }
 0x249   :  { %v773_v4 = vpack.c.bf16 %v704_v3, %v704_v3  ;;  %705 = vst [vmem:[#allocation11] sm:$0x1] %v704_v3 }
 0x24b   :  { %1151 = vmatmul.mubr.bf16.vlgmr.msra.gmra.mrb[4].mxu1 %v773_v4  ;;  %1192 = vmatmul.mubr.bf16.vlgmr.msra.gmra.mrb[8].mxu0 %v773_v4 }
 0x24c   :  { %1712 = vmatprep.mubr.msk.bf16.mxu1 %vm2174_vm0, %v2173_v0  ;;  %1732 = vmatprep.mubr.msk.bf16.mxu0 %vm2174_vm0, %v2173_v0 }
 0x24d   :  { %1697 = vmatpush3.bf16.msra.mxu1 %v1949_v5  ;;  %1717 = vmatpush3.bf16.msra.mxu0 %v1957_v13 }
 0x24e   :  { %1698 = vmatprep.subr.bf16.mxu1 %v2173_v0  ;;  %1718 = vmatprep.subr.bf16.mxu0 %v2173_v0 }
 0x251   :  { %1699 = vmatpush3.bf16.msra.mxu1 %v1950_v6  ;;  %1719 = vmatpush3.bf16.msra.mxu0 %v1958_v14 }
 0x252   :  { %1700 = vmatprep.subr.bf16.mxu1 %v2173_v0  ;;  %1720 = vmatprep.subr.bf16.mxu0 %v2173_v0 }
 0x255   :  { %1701 = vmatpush3.bf16.msra.mxu1 %v1951_v7  ;;  %1721 = vmatpush3.bf16.msra.mxu0 %v1959_v15 }
 0x256   :  { %1702 = vmatprep.subr.bf16.mxu1 %v2173_v0  ;;  %1722 = vmatprep.subr.bf16.mxu0 %v2173_v0 }
 0x259   :  { %1703 = vmatpush3.bf16.msra.mxu1 %v1952_v8  ;;  %1723 = vmatpush3.bf16.msra.mxu0 %v1960_v16 }
 0x25a   :  { %1704 = vmatprep.subr.bf16.mxu1 %v2173_v0  ;;  %1724 = vmatprep.subr.bf16.mxu0 %v2173_v0 }
 0x25d   :  { %1705 = vmatpush3.bf16.msra.mxu1 %v1953_v9  ;;  %1725 = vmatpush3.bf16.msra.mxu0 %v1961_v17 }
 0x25e   :  { %1706 = vmatprep.subr.bf16.mxu1 %v2173_v0  ;;  %1726 = vmatprep.subr.bf16.mxu0 %v2173_v0 }
 0x261   :  { %1707 = vmatpush3.bf16.msra.mxu1 %v1954_v10  ;;  %1727 = vmatpush3.bf16.msra.mxu0 %v1962_v18 }
 0x262   :  { %1708 = vmatprep.subr.bf16.mxu1 %v2173_v0  ;;  %1728 = vmatprep.subr.bf16.mxu0 %v2173_v0 }
 0x265   :  { %1709 = vmatpush3.bf16.msra.mxu1 %v1955_v11  ;;  %1729 = vmatpush3.bf16.msra.mxu0 %v1963_v56 }
 0x266   :  { %1710 = vmatprep.subr.bf16.mxu1 %v2173_v0  ;;  %1730 = vmatprep.subr.bf16.mxu0 %v2173_v0 }
 0x269   :  { %1711 = vmatpush3.bf16.msra.mxu1 %v1956_v12  ;;  %1731 = vmatpush3.bf16.msra.mxu0 %v1964_v57 }
 0x31e   :  { %v1152_v22 = vpop.f32.mrb[4].mxu1  ;;  %v1193_v23 = vpop.f32.mrb[8].mxu0 }
 0x31f   :  { %v1153_v24 = vadd.f32 %v1152_v22, %v1101_v20  ;;  %v1154_v25 = vpop.f32.mrb[5].mxu1  ;;  %v1195_v28 = vpop.f32.mrb[9].mxu0  ;;  %v1194_v29 = vadd.f32 %v1193_v23, %v1109_v38 }
 0x320   :  { %v1155_v30 = vadd.f32 %v1154_v25, %v1105_v21  ;;  %v1156_v31 = vpop.f32.mrb[6].mxu1  ;;  %v1197_v32 = vpop.f32.mrb[10].mxu0  ;;  %v1196_v39 = vadd.f32 %v1195_v28, %v1113_v27 }
 0x321   :  { %v1629_v33 = vmul.f32 -1.442695, %v1153_v24  ;;  %v1157_v34 = vpop.f32.mrb[7].mxu1  ;;  %v1198_v36 = vpop.f32.mrb[11].mxu0  ;;  %v1631_v40 = vmul.f32 -1.442695, %v1194_v29 }
 0x322   :  { %v1630_v37 = vmul.f32 -1.442695, %v1155_v30 }
 0x323   :  { %1981 = vpow2.f32 %v1629_v33 }
 0x324   :  { %1983 = vpow2.f32 %v1630_v37 }
 0x325   :  { %1985 = vtanh.f32 %v1196_v39 }
 0x326   :  { %1987 = vpow2.f32 %v1631_v40 }
 0x32d   :  { %v1982_v41 = vpop.eup %1981 }
 0x32e   :  { %v1209_v42 = vadd.f32 1.0, %v1982_v41  ;;  %v1984_v43 = vpop.eup %1983 }
 0x32f   :  { %v1210_v44 = vadd.f32 1.0, %v1984_v43  ;;  %v1986_v46 = vpop.eup %1985 }
 0x330   :  { %1989 = vrcp.f32 %v1209_v42  ;;  %v1988_v47 = vpop.eup %1987 }
 0x331   :  { %1991 = vrcp.f32 %v1210_v44  ;;  %v1211_v49 = vadd.f32 1.0, %v1988_v47 }
 0x333   :  { %1993 = vrcp.f32 %v1211_v49 }
 0x33a   :  { %v1990_v48 = vpop.eup %1989 }
 0x33b   :  { %v1220_v26 = vmul.f32 %v1990_v48, %v1986_v46  ;;  %v1992_v45 = vpop.eup %1991 }
 0x33c   :  { %v1219_v50 = vmul.f32 %v1992_v45, %v708_v35 }
 0x33d   :  { %v1994_v52 = vpop.eup %1993 }
 0x33e   :  { %v1221_v51 = vadd.f32 %v1220_v26, %v1219_v50 }
 0x340   :  { %1995 = vtanh.f32 %v1221_v51  ;;  %1225 = vst [vmem:[#allocation13 + $0x1] sm:$0x1] %v1221_v51 }
 0x34a   :  { %v1996_v53 = vpop.eup %1995 }
 0x34b   :  { %v1223_v54 = vmul.f32 %v1996_v53, %v1994_v52 }
 0x34d   :  { %v1242_v55 = vpack.c.bf16 %v1223_v54, %v1223_v54  ;;  %1224 = vst [vmem:[#allocation11 + $0x1] sm:$0x1] %v1223_v54 }
 0x34f   :  { %1713 = vmatmul.mubr.bf16.vlgmr.msra.gmra.mrb[8].mxu1 %v1242_v55 }
 0x422   :  { %v1326_v59 = vpop.f32.mrb[8].mxu1 }
 0x423   :  { %v1327_v60 = vadd.f32 %v1326_v59, %v1243_v58  ;;  %v1714_v61 = vpop.f32.mrb[9].mxu1 }
 0x424   :  { %v1329_v62 = vpop.f32.mrb[10].mxu1 }
 0x425   :  { %v1332_v63 = vmax.f32 %v1327_v60, 0.0  ;;  %v1715_v1 = vpop.f32.mrb[11].mxu1 }
 0x427   :  { %v1349_v2 = vpack.c.bf16 %v1332_v63, %v1332_v63 }
 0x429   :  { %1733 = vmatmul.mubr.bf16.vlgmr.msra.gmra.mrb[12].mxu0 %v1349_v2 }
 0x42a   :  { %2100 = shalt.err (!%p2097_p8)
}
 0x42b   :  { %s2101_s19 = scalar_lea.hbm %s2378_s7, 32 }
 0x42c   :  { %p2102_p9 = scmp.ne.s32.totalorder %s2378_s7, %s2101_s19  ;;  %p2105_p10 = scmp.lt.u32.totalorder %s2101_s19, %s2378_s7 }
 0x42e   :  { %p2107_p11 = pnand %p2105_p10, %p2102_p9 }
 0x430   :  { %2110 = shalt.err (!%p2107_p11)
}
 0x431   :  { %1465 = dma.vmem_to_hbm [thread:$0]  %s1463_s16, 32, %s2378_s7, [#allocation12]  }
 0x432   :  { %s2176_s27 = smov [#allocation13]  }
 0x433   :  { %s1472_s29 = sshll.u32 %s2176_s27, 4  ;;  %s1473_s29 = int_to_ptr.vmem [resolvable:$true] %s1472_s29 }
 0x434   :  { %s2111_s30 = scalar_lea.vmem %s1473_s29, 32  ;;  %p2116_p13 = scmp.lt.s32.totalorder %s1473_s29, %s1473_s29 }
 0x435   :  { %p2112_p12 = scmp.ne.s32.totalorder %s1473_s29, %s2111_s30  ;;  %p2117_p0 = scmp.lt.s32.totalorder %s2111_s30, %s2111_s30 }
 0x437   :  { %p2118_p1 = por %p2117_p0, %p2116_p13 }
 0x439   :  { %p2119_p2 = pnand %p2118_p1, %p2112_p12 }
 0x43b   :  { %2122 = shalt.err (!%p2119_p2)
}
 0x43c   :  { %s2123_s9 = scalar_lea.hbm %s2379_s8, 32 }
 0x43d   :  { %p2124_p3 = scmp.ne.s32.totalorder %s2379_s8, %s2123_s9  ;;  %p2127_p4 = scmp.lt.u32.totalorder %s2123_s9, %s2379_s8 }
 0x43f   :  { %p2129_p5 = pnand %p2127_p4, %p2124_p3 }
 0x441   :  { %2132 = shalt.err (!%p2129_p5)
}
 0x442   :  { %1475 = dma.vmem_to_hbm [thread:$0]  %s1473_s29, 32, %s2379_s8, [#allocation12]   ;;  %v1350_v0 = vld [vmem:[#allocation8 + $0x4] ss:$0 sm:$0xff] }
 0x443   :  { %s2177_s12 = smov [#allocation10]  }
 0x444   :  { %s1452_s1 = sshll.u32 %s2177_s12, 4  ;;  %s1453_s1 = int_to_ptr.vmem [resolvable:$true] %s1452_s1 }
 0x445   :  { %s2133_s13 = scalar_lea.vmem %s1453_s1, 16  ;;  %s2137_s14 = scalar_lea.vmem %s1453_s1, 32 }
 0x446   :  { %p2134_p6 = scmp.ne.s32.totalorder %s1453_s1, %s2133_s13  ;;  %p2138_p7 = scmp.lt.s32.totalorder %s1453_s1, %s1453_s1 }
 0x447   :  { %p2139_p8 = scmp.lt.s32.totalorder %s2137_s14, %s2133_s13 }
 0x449   :  { %p2140_p9 = por %p2139_p8, %p2138_p7 }
 0x44b   :  { %p2141_p10 = pnand %p2140_p9, %p2134_p6 }
 0x4fc   :  { %v1433_v3 = vpop.f32.mrb[12].mxu0 }
 0x4fd   :  { %v1434_v4 = vadd.f32 %v1433_v3, %v1350_v0  ;;  %v1734_v5 = vpop.f32.mrb[13].mxu0 }
 0x4fe   :  { %v1436_v6 = vpop.f32.mrb[14].mxu0 }
 0x4ff   :  { %v1648_v7 = vmul.f32 -1.442695, %v1434_v4  ;;  %v1735_v8 = vpop.f32.mrb[15].mxu0 }
 0x501   :  { %1997 = vpow2.f32 %v1648_v7 }
 0x50b   :  { %v1998_v9 = vpop.eup %1997 }
 0x50c   :  { %v1442_v10 = vadd.f32 1.0, %v1998_v9 }
 0x50e   :  { %1999 = vrcp.f32 %v1442_v10 }
 0x518   :  { %v2000_v11 = vpop.eup %1999 }
 0x519   :  { %1445 = vst [vmem:[#allocation10] sm:$0x1] %v2000_v11 }
 0x51a   :  { %2144 = shalt.err (!%p2141_p10)
}
 0x51b   :  { %s2145_s2 = scalar_lea.hbm %s2377_s6, 16 }
 0x51c   :  { %p2146_p11 = scmp.ne.s32.totalorder %s2377_s6, %s2145_s2  ;;  %p2149_p12 = scmp.lt.u32.totalorder %s2145_s2, %s2377_s6 }
 0x51e   :  { %p2151_p13 = pnand %p2149_p12, %p2146_p11 }
 0x520   :  { %2154 = shalt.err (!%p2151_p13)
}
 0x521   :  { %1455 = dma.vmem_to_hbm [thread:$0]  %s1453_s1, 16, %s2377_s6, [#allocation4]  }
 0x522   :  { %2161 = dma.done.wait [#allocation4], 16  }
 0x523   :  { %2162 = vsyncadd [#allocation4], 4294967280 }
 0x524   :  { %2163 = dma.done.wait [#allocation12], 64  }
 0x525   :  { %2164 = vsyncadd [#allocation12], 4294967232 }
 0x526   :  { %1485 = vsyncpa [#allocation3], 1 }
 0x527   :  { %1486 = vsyncpa [#allocation6], 1 }
 0x528   :  { %1487 = vsyncpa [#allocation9], 1 }
 0x529   :  { %1488 = vsyncpa [#allocation4], 1 }
 0x52a   :  { %1489 = vsyncpa [#allocation12], 1 }

</bundles_post_ra>
